<compile_context>
chip_gen: v5e
topology: v5e:2x2
jax: 0.10.0
libtpu: 0.0.40
codegen_flags: <defaults>
</compile_context>

<pallas_src>
import functools

import jax
import jax.numpy as jnp
from jax import lax
from jax.experimental import pallas as pl
from jax.experimental.pallas import tpu as pltpu


def _llama_mlp_kernel(x_ref, wgu_ref, wd_ref, o_ref, acc_ref):
    """One (token-tile, intermediate-tile) step of the fused MLP.

    x_ref  : (tm, D)      activations (resident across the I axis)
    wgu_ref: (2, ti, D)   stacked [gate; up] weight slice (PyTorch [out, in] rows)
    wd_ref : (ti, D)      down_proj weight slice, stored transposed ([interm, n_embed])
    o_ref  : (tm, D)      output tile
    acc_ref: (tm, D)      f32 accumulator (VMEM scratch, lives across the I axis)
    """
    i = pl.program_id(1)
    ti = wd_ref.shape[0]
    D = wd_ref.shape[1]

    # Single fused gate|up matmul: (tm, D) x (2*ti, D)^T -> (tm, 2*ti), f32 accum on MXU.
    w_gu = wgu_ref[...].reshape(2 * ti, D)
    x = x_ref[...].astype(w_gu.dtype)
    gu = lax.dot_general(x, w_gu, (((1,), (1,)), ((), ())),
                         preferred_element_type=jnp.float32)
    g = gu[:, :ti]
    u = gu[:, ti:]

    # SiLU(g) * u in f32 (VPU/EUP work, shadowed by the MXU).
    h = (g * jax.nn.sigmoid(g)) * u

    # Partial down projection: (tm, ti) x (ti, D) -> (tm, D), accumulated in f32.
    part = lax.dot_general(h.astype(wd_ref.dtype), wd_ref[...],
                           (((1,), (0,)), ((), ())),
                           preferred_element_type=jnp.float32)

    @pl.when(i == 0)
    def _():
        acc_ref[...] = part          # write-through on first step (no zero + RMW)

    @pl.when(i != 0)
    def _():
        acc_ref[...] += part

    @pl.when(i == pl.num_programs(1) - 1)
    def _():
        o_ref[...] = acc_ref[...].astype(o_ref.dtype)


def pack_llama_mlp_weights(w_gate, w_up, w_down, dtype=None):
    """One-time (offline) weight repack.

    w_gate, w_up : [interm, n_embed]   (PyTorch nn.Linear [out_features, in_features])
    w_down       : [n_embed, interm]
    Returns:
      w_gu    : [2, interm, n_embed]   stacked gate|up
      w_down_t: [interm, n_embed]      down_proj transposed (contiguous-row DMA tiles)
    """
    w_gu = jnp.stack([w_gate, w_up], axis=0)
    w_down_t = jnp.transpose(w_down)
    if dtype is not None:
        w_gu = w_gu.astype(dtype)
        w_down_t = w_down_t.astype(dtype)
    return w_gu, w_down_t


def _tpu_vmem_capacity_bytes():
    """Best-effort VMEM capacity query; conservative (v7x per-TC) fallback."""
    try:
        info = pltpu.get_tpu_info()
        for name in ("vmem_capacity_bytes", "vmem_size_bytes", "vmem_bytes"):
            v = getattr(info, name, None)
            if isinstance(v, int) and v >= (16 << 20):
                return v
    except Exception:
        pass
    return 64 << 20


def _tile_candidates(n, granule, cap):
    """Descending multiples of `granule` that divide n and are <= cap; fallback [n]."""
    cands = []
    if n % granule == 0 and n >= granule:
        q = n // granule
        for t in range(max(1, min(cap // granule, q)), 0, -1):
            if q % t == 0:
                cands.append(t * granule)
    if not cands:
        cands = [n]
    return cands


def _select_tiles(M, D, I, xb, wb, vmem_budget, tm_target, ti_target):
    def est(tm_, ti_):
        act = tm_ * D * xb
        wgt = 3 * ti_ * D * wb          # gate + up + down weight slices
        return (2 * act                 # x tile, double-buffered
                + 2 * wgt               # weight tiles, double-buffered
                + 2 * act               # output tile, double-buffered
                + tm_ * D * 4           # f32 accumulator scratch
                + 3 * tm_ * ti_ * 4     # gu / h f32 intermediates
                + 2 * ti_ * D * wb)     # slack for the in-kernel (2,ti,D)->(2ti,D) view

    tm_cands = _tile_candidates(M, 8, tm_target)
    ti_cands = _tile_candidates(I, 128, ti_target)

    # tm sets FLOP/weight-byte: maximize it first, then take the largest fitting ti.
    for cand_tm in tm_cands:
        for cand_ti in ti_cands:
            if est(cand_tm, cand_ti) <= vmem_budget:
                return cand_tm, cand_ti, est(cand_tm, cand_ti)
    tm_, ti_ = tm_cands[-1], ti_cands[-1]
    return tm_, ti_, est(tm_, ti_)


@functools.partial(jax.jit, static_argnames=("tm", "ti"))
def llama_mlp(x, w_gu, w_down_t, *, tm=None, ti=None):
    """Fused LlamaMLP forward.

    x        : [B, S, n_embed]
    w_gu     : [2, interm, n_embed]  (from pack_llama_mlp_weights)
    w_down_t : [interm, n_embed]     (from pack_llama_mlp_weights)
    Returns [B, S, n_embed] in x.dtype.
    """
    B, S, D = x.shape
    I = w_gu.shape[1]
    M = B * S

    xb = x.dtype.itemsize
    wb = w_gu.dtype.itemsize

    # Pad tokens to a multiple of 8 so tm can always be sublane-aligned.
    M_p = ((M + 7) // 8) * 8
    x2 = x.reshape(M, D)
    if M_p != M:
        x2 = jnp.pad(x2, ((0, M_p - M), (0, 0)))

    # Generation-aware targets / VMEM budget.
    vmem_cap = _tpu_vmem_capacity_bytes()
    if vmem_cap >= (100 << 20):          # v5e / v6e: 128 MiB VMEM
        tm_target, ti_target = 768, 512
    else:                                # v7x: 64 MiB per-TC VMEM
        tm_target, ti_target = 512, 256
    vmem_budget = (vmem_cap * 3) // 4

    if tm is None or ti is None:
        tm_sel, ti_sel, need = _select_tiles(M_p, D, I, xb, wb,
                                             vmem_budget, tm_target, ti_target)
        tm = tm_sel if tm is None else tm
        ti = ti_sel if ti is None else ti
    else:
        _, _, need = _select_tiles(M_p, D, I, xb, wb, vmem_budget, tm, ti)
    assert M_p % tm == 0 and I % ti == 0, (M_p, tm, I, ti)

    vmem_limit = int(min(max(need * 5 // 4 + (4 << 20), 32 << 20),
                         vmem_cap - (8 << 20)))

    n_token_tiles = M_p // tm
    flops = 6 * M_p * D * I
    bytes_accessed = 2 * M_p * D * xb + n_token_tiles * 3 * I * D * wb
    cost = pl.CostEstimate(flops=flops, transcendentals=M_p * I,
                           bytes_accessed=bytes_accessed)

    out = pl.pallas_call(
        _llama_mlp_kernel,
        out_shape=jax.ShapeDtypeStruct((M_p, D), x.dtype),
        grid_spec=pltpu.PrefetchScalarGridSpec(
            num_scalar_prefetch=0,
            grid=(n_token_tiles, I // ti),
            in_specs=[
                pl.BlockSpec((tm, D), lambda m, i: (m, 0)),      # x tile (resident over i)
                pl.BlockSpec((2, ti, D), lambda m, i: (0, i, 0)),  # gate|up slice
                pl.BlockSpec((ti, D), lambda m, i: (i, 0)),      # down slice (transposed)
            ],
            out_specs=pl.BlockSpec((tm, D), lambda m, i: (m, 0)),
            scratch_shapes=[pltpu.VMEM((tm, D), jnp.float32)],
        ),
        compiler_params=pltpu.CompilerParams(
            dimension_semantics=("parallel", "arbitrary"),
            vmem_limit_bytes=vmem_limit,
        ),
        cost_estimate=cost,
    )(x2, w_gu, w_down_t)

    # TODO(synk): for v7x decode (M_p//tm == 1) split the I axis across the two
    # TensorCores with a final partial-sum add to keep both cores busy.

    if M_p != M:
        out = out[:M]
    return out.reshape(B, S, D)


def llama_mlp_ref(x, w_gate, w_up, w_down):
    g = jnp.einsum("bsd,id->bsi", x, w_gate)
    u = jnp.einsum("bsd,id->bsi", x, w_up)
    h = jax.nn.silu(g) * u
    return jnp.einsum("bsi,di->bsd", h, w_down)


if __name__ == "__main__":
    # Small LlamaConfig-consistent shapes.
    batch, seq, n_embed, interm_dims = 2, 8, 32, 64
    dtype = jnp.float32  # config.default_dtype

    key = jax.random.PRNGKey(0)
    kx, kg, ku, kd = jax.random.split(key, 4)

    x = jax.random.normal(kx, (batch, seq, n_embed), dtype=dtype)
    # nn.Linear weights: [out_features, in_features], bias=False.
    w_gate = jax.random.normal(kg, (interm_dims, n_embed), dtype=dtype) * 0.05
    w_up = jax.random.normal(ku, (interm_dims, n_embed), dtype=dtype) * 0.05
    w_down = jax.random.normal(kd, (n_embed, interm_dims), dtype=dtype) * 0.05

    # One-time weight repack (offline in a real model).
    w_gu, w_down_t = pack_llama_mlp_weights(w_gate, w_up, w_down)

    out = llama_mlp(x, w_gu, w_down_t)
    out = jax.block_until_ready(out)

    ref = llama_mlp_ref(x, w_gate, w_up, w_down)
    assert out.shape == (batch, seq, n_embed)
    assert jnp.allclose(out, ref, atol=1e-4, rtol=1e-4), "mismatch vs reference"

    print("KERNEL_OK")
</pallas_src>

<mosaic_0001>
module attributes {stable_mosaic.version = 11 : i64} {
  func.func @_llama_mlp_kernel(%arg0: i32, %arg1: i32, %arg2: memref<16x32xf32, #tpu.memory_space<vmem>>, %arg3: memref<2x64x32xf32, #tpu.memory_space<vmem>>, %arg4: memref<64x32xf32, #tpu.memory_space<vmem>>, %arg5: memref<16x32xf32, #tpu.memory_space<vmem>>, %arg6: memref<16x32xf32, #tpu.memory_space<vmem>>) attributes {dimension_semantics = [#tpu.dimension_semantics<parallel>, #tpu.dimension_semantics<arbitrary>], iteration_bounds = array<i64: 1, 1>, scalar_prefetch = 0 : i64, scratch_operands = 1 : i64, tpu.core_type = #tpu.core_type<tc>, window_params = [{transform_indices = @transform_0, window_bounds = array<i64: 16, 32>}, {transform_indices = @transform_1, window_bounds = array<i64: 2, 64, 32>}, {transform_indices = @transform_2, window_bounds = array<i64: 64, 32>}, {transform_indices = @transform_3, window_bounds = array<i64: 16, 32>}]} {
    %c0 = arith.constant 0 : index
    %c0_0 = arith.constant 0 : index
    %c0_1 = arith.constant 0 : index
    %0 = vector.load %arg3[%c0, %c0_0, %c0_1] : memref<2x64x32xf32, #tpu.memory_space<vmem>>, vector<2x64x32xf32>
    %1 = vector.shape_cast %0 : vector<2x64x32xf32> to vector<128x32xf32>
    %c0_2 = arith.constant 0 : index
    %c0_3 = arith.constant 0 : index
    %2 = vector.load %arg2[%c0_2, %c0_3] : memref<16x32xf32, #tpu.memory_space<vmem>>, vector<16x32xf32>
    %cst = arith.constant dense<0.000000e+00> : vector<16x128xf32>
    %3 = tpu.matmul %2, %1, %cst {dimension_numbers = #tpu.dot_dimension_numbers<[1], [1], [0], [0], [0, 0, 1, 0], [], []>} : vector<16x32xf32>, vector<128x32xf32>, vector<16x128xf32> -> vector<16x128xf32>
    %4 = vector.extract_strided_slice %3 {offsets = [0, 0], sizes = [16, 64], strides = [1, 1]} : vector<16x128xf32> to vector<16x64xf32>
    %5 = vector.extract_strided_slice %3 {offsets = [0, 64], sizes = [16, 64], strides = [1, 1]} : vector<16x128xf32> to vector<16x64xf32>
    %6 = arith.negf %4 : vector<16x64xf32>
    %7 = math.exp %6 : vector<16x64xf32>
    %cst_4 = arith.constant 1.000000e+00 : f32
    %8 = vector.broadcast %cst_4 : f32 to vector<16x64xf32>
    %9 = arith.addf %8, %7 : vector<16x64xf32>
    %10 = arith.divf %8, %9 : vector<16x64xf32>
    %11 = arith.mulf %4, %10 : vector<16x64xf32>
    %12 = arith.mulf %11, %5 : vector<16x64xf32>
    %c0_5 = arith.constant 0 : index
    %c0_6 = arith.constant 0 : index
    %13 = vector.load %arg4[%c0_5, %c0_6] : memref<64x32xf32, #tpu.memory_space<vmem>>, vector<64x32xf32>
    %cst_7 = arith.constant dense<0.000000e+00> : vector<16x32xf32>
    %14 = tpu.matmul %12, %13, %cst_7 {dimension_numbers = #tpu.dot_dimension_numbers<[1], [0], [0], [1], [0, 0, 1, 1], [], []>} : vector<16x64xf32>, vector<64x32xf32>, vector<16x32xf32> -> vector<16x32xf32>
    %c0_i32 = arith.constant 0 : i32
    %15 = arith.cmpi eq, %arg1, %c0_i32 : i32
    %16 = arith.extui %15 : i1 to i32
    %c0_i32_8 = arith.constant 0 : i32
    %17 = arith.cmpi ne, %16, %c0_i32_8 : i32
    scf.if %17 {
      %c0_13 = arith.constant 0 : index
      %c0_14 = arith.constant 0 : index
      %24 = vector.load %arg6[%c0_13, %c0_14] : memref<16x32xf32, #tpu.memory_space<vmem>>, vector<16x32xf32>
      tpu.vector_store %arg6[%c0_13, %c0_14], %14 {strides = array<i32>} : memref<16x32xf32, #tpu.memory_space<vmem>>, vector<16x32xf32>,
    } else {
    }
    %c0_i32_9 = arith.constant 0 : i32
    %18 = arith.cmpi ne, %arg1, %c0_i32_9 : i32
    %19 = arith.extui %18 : i1 to i32
    %c0_i32_10 = arith.constant 0 : i32
    %20 = arith.cmpi ne, %19, %c0_i32_10 : i32
    scf.if %20 {
      %c0_13 = arith.constant 0 : index
      %c0_14 = arith.constant 0 : index
      %24 = vector.load %arg6[%c0_13, %c0_14] : memref<16x32xf32, #tpu.memory_space<vmem>>, vector<16x32xf32>
      %25 = arith.addf %24, %14 : vector<16x32xf32>
      %c0_15 = arith.constant 0 : index
      %c0_16 = arith.constant 0 : index
      %26 = vector.load %arg6[%c0_15, %c0_16] : memref<16x32xf32, #tpu.memory_space<vmem>>, vector<16x32xf32>
      tpu.vector_store %arg6[%c0_15, %c0_16], %25 {strides = array<i32>} : memref<16x32xf32, #tpu.memory_space<vmem>>, vector<16x32xf32>,
    } else {
    }
    %c0_i32_11 = arith.constant 0 : i32
    %21 = arith.cmpi eq, %arg1, %c0_i32_11 : i32
    %22 = arith.extui %21 : i1 to i32
    %c0_i32_12 = arith.constant 0 : i32
    %23 = arith.cmpi ne, %22, %c0_i32_12 : i32
    scf.if %23 {
      %c0_13 = arith.constant 0 : index
      %c0_14 = arith.constant 0 : index
      %24 = vector.load %arg6[%c0_13, %c0_14] : memref<16x32xf32, #tpu.memory_space<vmem>>, vector<16x32xf32>
      %c0_15 = arith.constant 0 : index
      %c0_16 = arith.constant 0 : index
      %25 = vector.load %arg5[%c0_15, %c0_16] : memref<16x32xf32, #tpu.memory_space<vmem>>, vector<16x32xf32>
      tpu.vector_store %arg5[%c0_15, %c0_16], %24 {strides = array<i32>} : memref<16x32xf32, #tpu.memory_space<vmem>>, vector<16x32xf32>,
    } else {
    }
    return
  }
  func.func @transform_0(%arg0: i32, %arg1: i32) -> (i32, i32) {
    %c0_i32 = arith.constant 0 : i32
    %c0_i32_0 = arith.constant 0 : i32
    return %arg0, %c0_i32 : i32, i32
  }
  func.func @transform_1(%arg0: i32, %arg1: i32) -> (i32, i32, i32) {
    %c0_i32 = arith.constant 0 : i32
    %c0_i32_0 = arith.constant 0 : i32
    %c0_i32_1 = arith.constant 0 : i32
    return %c0_i32, %arg1, %c0_i32_0 : i32, i32, i32
  }
  func.func @transform_2(%arg0: i32, %arg1: i32) -> (i32, i32) {
    %c0_i32 = arith.constant 0 : i32
    %c0_i32_0 = arith.constant 0 : i32
    return %arg1, %c0_i32 : i32, i32
  }
  func.func @transform_3(%arg0: i32, %arg1: i32) -> (i32, i32) {
    %c0_i32 = arith.constant 0 : i32
    %c0_i32_0 = arith.constant 0 : i32
    return %arg0, %c0_i32 : i32, i32
  }
}

</mosaic_0001>

<bundles_post_ra>
// kernel: llama_mlp.1
= control target key start
LH: loop header
LB: loop body
LE: loop exit
PB: predicated region body
PF: predicated region fallthrough
CT: control target
= control target key end

     0   :  { %vm33_vm0 = vcmask 261120   ;;  %s459_s0 = inlined_call_operand.vmem [shape: f32[16,32], index: 0, kind: input, shape index: {}]   ;;  %s460_s1 = inlined_call_operand.vmem [shape: f32[2,64,32], index: 1, kind: input, shape index: {}]   ;;  %s461_s2 = inlined_call_operand.vmem [shape: f32[64,32], index: 2, kind: input, shape index: {}]   ;;  %s462_s3 = inlined_call_operand.hbm [shape: f32[16,32], index: 3, kind: output, shape index: {}]  }
   0x1   :  { %v30_v0 = vld [vmem:[%s460_s1 + $0x78] sm:$0xff]  ;;  %v29_v1 = vld [vmem:[%s460_s1 + $0x70] sm:$0xff] }
   0x2   :  { %240 = vmatpush.xpose.msk.msra.mxu0 %vm33_vm0, %v30_v0  ;;  %262 = vmatpush.xpose.msk.msra.mxu2 %vm33_vm0, %v30_v0 }
   0x3   :  { %8 = vsyncpa [#allocation4], 0  ;;  %v28_v2 = vld [vmem:[%s460_s1 + $0x68] sm:$0xff]  ;;  %v27_v3 = vld [vmem:[%s460_s1 + $0x60] sm:$0xff]  ;;  %s316_s21 = smov 64   ;;  %vm169_vm8 = vcmask 523264  }
   0x4   :  { %v26_v4 = vld [vmem:[%s460_s1 + $0x58] sm:$0xff]  ;;  %v25_v5 = vld [vmem:[%s460_s1 + $0x50] sm:$0xff]  ;;  %v24_v6 = vld [vmem:[%s460_s1 + $0x48] sm:$0xff]  ;;  %s228_s12 = sshll.u32 %s462_s3, 4  ;;  %s318_s13 = smov 128   ;;  %s229_s12 = int_to_ptr.hbm [resolvable:$true] %s228_s12 }
   0x5   :  { %v23_v7 = vld [vmem:[%s460_s1 + $0x40] sm:$0xff]  ;;  %v22_v8 = vld [vmem:[%s460_s1 + $0x38] sm:$0xff]  ;;  %v21_v9 = vld [vmem:[%s460_s1 + $0x30] sm:$0xff]  ;;  %s319_s14 = smov 8  }
   0x6   :  { %241 = vmatpush.xpose.msk.msra.mxu0 %vm33_vm0, %v29_v1  ;;  %263 = vmatpush.xpose.msk.msra.mxu2 %vm33_vm0, %v29_v1  ;;  %v20_v10 = vld [vmem:[%s460_s1 + $0x28] sm:$0xff]  ;;  %v19_v11 = vld [vmem:[%s460_s1 + $0x20] sm:$0xff]  ;;  %v18_v12 = vld [vmem:[%s460_s1 + $0x18] sm:$0xff] }
   0x7   :  { %v17_v13 = vld [vmem:[%s460_s1 + $0x10] sm:$0xff]  ;;  %v16_v14 = vld [vmem:[%s460_s1 + $0x8] sm:$0xff]  ;;  %v15_v15 = vld [vmem:[%s460_s1] sm:$0xff] }
   0x8   :  { %v31_v16 = vld [vmem:[%s459_s0] sm:$0xff]  ;;  %v32_v17 = vld [vmem:[%s459_s0 + $0x8] sm:$0xff]  ;;  %v168_v19 = vld [vmem:[%s461_s2 + $0x38] sm:$0xff] }
   0x9   :  { %v167_v20 = vld [vmem:[%s461_s2 + $0x30] sm:$0xff]  ;;  %184 = vmatpush.msra.mxu1 %v168_v19  ;;  %v166_v21 = vld [vmem:[%s461_s2 + $0x28] sm:$0xff]  ;;  %v165_v22 = vld [vmem:[%s461_s2 + $0x20] sm:$0xff] }
   0xa   :  { %242 = vmatpush.xpose.msk.msra.mxu0 %vm33_vm0, %v28_v2  ;;  %264 = vmatpush.xpose.msk.msra.mxu2 %vm33_vm0, %v28_v2  ;;  %v164_v24 = vld [vmem:[%s461_s2 + $0x18] sm:$0xff]  ;;  %v163_v25 = vld [vmem:[%s461_s2 + $0x10] sm:$0xff]  ;;  %v162_v26 = vld [vmem:[%s461_s2 + $0x8] sm:$0xff] }
   0xb   :  { %185 = vmatpush.msra.mxu1 %v167_v20  ;;  %v161_v32 = vld [vmem:[%s461_s2] sm:$0xff]  ;;  %s317_s2 = smov [#allocation3]  }
   0xc   :  { %s226_s9 = sshll.u32 %s317_s2, 4  ;;  %s227_s9 = int_to_ptr.vmem [resolvable:$true] %s226_s9 }
   0xd   :  { %186 = vmatpush.msra.mxu1 %v166_v21 }
   0xe   :  { %243 = vmatpush.xpose.msk.msra.mxu0 %vm33_vm0, %v27_v3  ;;  %265 = vmatpush.xpose.msk.msra.mxu2 %vm33_vm0, %v27_v3 }
   0xf   :  { %187 = vmatpush.msra.mxu1 %v165_v22 }
  0x11   :  { %188 = vmatpush.msra.mxu1 %v164_v24 }
  0x12   :  { %244 = vmatpush.xpose.msk.msra.mxu0 %vm33_vm0, %v26_v4  ;;  %266 = vmatpush.xpose.msk.msra.mxu2 %vm33_vm0, %v26_v4 }
  0x13   :  { %189 = vmatpush.msra.mxu1 %v163_v25 }
  0x15   :  { %190 = vmatpush.msra.mxu1 %v162_v26 }
  0x16   :  { %245 = vmatpush.xpose.msk.msra.mxu0 %vm33_vm0, %v25_v5  ;;  %267 = vmatpush.xpose.msk.msra.mxu2 %vm33_vm0, %v25_v5 }
  0x17   :  { %191 = vmatpush.msra.mxu1 %v161_v32 }
  0x1a   :  { %246 = vmatpush.xpose.msk.msra.mxu0 %vm33_vm0, %v24_v6  ;;  %268 = vmatpush.xpose.msk.msra.mxu2 %vm33_vm0, %v24_v6 }
  0x1e   :  { %247 = vmatpush.xpose.msk.msra.mxu0 %vm33_vm0, %v23_v7  ;;  %269 = vmatpush.xpose.msk.msra.mxu2 %vm33_vm0, %v23_v7 }
  0x22   :  { %248 = vmatpush.xpose.msk.msra.mxu0 %vm33_vm0, %v22_v8  ;;  %270 = vmatpush.xpose.msk.msra.mxu2 %vm33_vm0, %v22_v8 }
  0x26   :  { %249 = vmatpush.xpose.msk.msra.mxu0 %vm33_vm0, %v21_v9  ;;  %271 = vmatpush.xpose.msk.msra.mxu2 %vm33_vm0, %v21_v9 }
  0x2a   :  { %250 = vmatpush.xpose.msk.msra.mxu0 %vm33_vm0, %v20_v10  ;;  %272 = vmatpush.xpose.msk.msra.mxu2 %vm33_vm0, %v20_v10 }
  0x2e   :  { %251 = vmatpush.xpose.msk.msra.mxu0 %vm33_vm0, %v19_v11  ;;  %273 = vmatpush.xpose.msk.msra.mxu2 %vm33_vm0, %v19_v11 }
  0x32   :  { %252 = vmatpush.xpose.msk.msra.mxu0 %vm33_vm0, %v18_v12  ;;  %274 = vmatpush.xpose.msk.msra.mxu2 %vm33_vm0, %v18_v12 }
  0x36   :  { %253 = vmatpush.xpose.msk.msra.mxu0 %vm33_vm0, %v17_v13  ;;  %275 = vmatpush.xpose.msk.msra.mxu2 %vm33_vm0, %v17_v13 }
  0x3a   :  { %254 = vmatpush.xpose.msk.msra.mxu0 %vm33_vm0, %v16_v14  ;;  %276 = vmatpush.xpose.msk.msra.mxu2 %vm33_vm0, %v16_v14 }
  0x3e   :  { %255 = vmatpush.xpose.msk.msra.mxu0 %vm33_vm0, %v15_v15  ;;  %277 = vmatpush.xpose.msk.msra.mxu2 %vm33_vm0, %v15_v15 }
  0x41   :  { %256 = vmatmul.msk.f32.vlgmr.msra.gmra.mxu0 %vm33_vm0, %v31_v16  ;;  %257 = vmatmul.msk.f32.vlgmr.msra.gmra.mxu2 %vm33_vm0, %v32_v17 }
  0xbe   :  { %v105_v18 = vpop.f32.mrf.mxu0 }
  0xbf   :  { %153 = vrot.lane.b32.xlu0 %v105_v18, %s316_s21  ;;  %v258_v27 = vmul.f32 -1.442695, %v105_v18 }
  0xc1   :  { %282 = vpow2.f32 %v258_v27 }
  0xc4   :  { %v108_v23 = vpop.f32.mrf.mxu2 }
  0xc5   :  { %v259_v28 = vmul.f32 -1.442695, %v108_v23 }
  0xc7   :  { %155 = vrot.lane.b32.xlu0 %v108_v23, %s316_s21  ;;  %v283_v29 = vpop.eup %282  ;;  %284 = vpow2.f32 %v259_v28 }
  0xc8   :  { %v117_v30 = vadd.f32 1.0, %v283_v29 }
  0xca   :  { %286 = vrcp.f32 %v117_v30  ;;  %v130_v42 = vand.u32 2147483648, %v117_v30  ;;  %vm124_vm2 = vweird.f32 %v117_v30  ;;  %v128_v43 = vand.u32 2147483647, %v117_v30 }
  0xcc   :  { %v131_v46 = vor.u32 1.1754944e-38, %v130_v42  ;;  %vm129_vm4 = vcmp.eq.f32.partialorder %v128_v43, 8.507059e+37 }
  0xcd   :  { %v285_v31 = vpop.eup %284 }
  0xce   :  { %v118_v33 = vadd.f32 1.0, %v285_v31 }
  0xd0   :  { %v287_v34 = vpop.eup %286  ;;  %288 = vrcp.f32 %v118_v33  ;;  %v145_v49 = vand.u32 2147483648, %v118_v33  ;;  %vm139_vm6 = vweird.f32 %v118_v33  ;;  %v143_v51 = vand.u32 2147483647, %v118_v33 }
  0xd1   :  { %v120_v35 = vmul.f32 %v287_v34, %v117_v30  ;;  %vm125_vm1 = vweird.f32 %v287_v34 }
  0xd2   :  { %vm126_vm3 = vmor %vm124_vm2, %vm125_vm1  ;;  %v146_v55 = vor.u32 1.1754944e-38, %v145_v49  ;;  %vm144_vm9 = vcmp.eq.f32.partialorder %v143_v51, 8.507059e+37 }
  0xd3   :  { %v121_v36 = vsub.f32 1.0, %v120_v35 }
  0xd5   :  { %v122_v38 = vmul.f32 %v287_v34, %v121_v36 }
  0xd6   :  { %v289_v37 = vpop.eup %288 }
  0xd7   :  { %v135_v39 = vmul.f32 %v289_v37, %v118_v33  ;;  %v123_v40 = vadd.f32 %v287_v34, %v122_v38  ;;  %vm140_vm5 = vweird.f32 %v289_v37 }
  0xd8   :  { %vm141_vm7 = vmor %vm139_vm6, %vm140_vm5 }
  0xd9   :  { %v136_v41 = vsub.f32 1.0, %v135_v39  ;;  %v127_v44 = vsel %vm126_vm3, %v287_v34, %v123_v40 }
  0xda   :  { %v132_v47 = vsel %vm129_vm4, %v131_v46, %v127_v44 }
  0xdb   :  { %v137_v45 = vmul.f32 %v289_v37, %v136_v41  ;;  %v149_v50 = vmul.f32 %v132_v47, %v105_v18 }
  0xdd   :  { %v138_v48 = vadd.f32 %v289_v37, %v137_v45 }
  0xdf   :  { %v142_v53 = vsel %vm141_vm7, %v289_v37, %v138_v48 }
  0xe0   :  { %v147_v56 = vsel %vm144_vm9, %v146_v55, %v142_v53 }
  0xe1   :  { %v150_v57 = vmul.f32 %v147_v56, %v108_v23 }
 0x131   :  { %v154_v52 = vpop.permute.xlu0 %153 }
 0x132   :  { %v159_v54 = vmul.f32 %v154_v52, %v149_v50 }
 0x134   :  { %260 = vmatmul.msk.f32.vlgmr.msra.gmra.mxu1 %vm169_vm8, %v159_v54 }
 0x139   :  { %v156_v58 = vpop.permute.xlu0 %155 }
 0x13a   :  { %v160_v59 = vmul.f32 %v156_v58, %v150_v57 }
 0x13c   :  { %261 = vmatmul.msk.f32.gmra.mxu1 %vm169_vm8, %v160_v59 }
 0x1b1   :  { %v193_v60 = vpop.f32.mrf.mxu1 }
 0x1b2   :  { %203 = vst.msk [vmem:[#allocation2] sm:$0xff] %vm33_vm0, %v193_v60 }
 0x1b9   :  { %v196_v61 = vpop.f32.mrf.mxu1  ;;  %v218_v62 = vld [vmem:[#allocation2] sm:$0xff] }
 0x1ba   :  { %204 = vst.msk [vmem:[#allocation2 + $0x8] sm:$0xff] %vm33_vm0, %v196_v61 }
 0x1bb   :  { %220 = vst.msk [vmem:[#allocation3] sm:$0xff] %vm33_vm0, %v218_v62 }
 0x1c1   :  { %v219_v63 = vld [vmem:[#allocation2 + $0x8] sm:$0xff] }
 0x1c2   :  { %221 = vst.msk [vmem:[#allocation3 + $0x8] sm:$0xff] %vm33_vm0, %v219_v63 }
 0x1c3   :  { %234 = dma.vmem_to_hbm [thread:$0]  %s227_s9, 256, %s229_s12, [#allocation4], %s318_s13, %s318_s13, %s319_s14  }
 0x1c4   :  { %314 = dma.done.wait [#allocation4], 256  }
 0x1c5   :  { %315 = vsyncadd [#allocation4], 4294967040 }
 0x1c6   :  { %239 = vsyncpa [#allocation4], 1 }

</bundles_post_ra>
